<compile_context>
chip_gen: v6e
topology: v6e:2x2x1
jax: 0.10.0
libtpu: 0.0.40
codegen_flags: <defaults>
</compile_context>

<pallas_src>
import functools

import jax
import jax.numpy as jnp
from jax.experimental import pallas as pl
from jax.experimental.pallas import tpu as pltpu


def _round_up(v, m):
    return ((v + m - 1) // m) * m


def _cdiv(a, b):
    return (a + b - 1) // b


def _device_defaults():
    """(vmem_limit_bytes, num_tensorcores) heuristics per TPU generation."""
    kind = ""
    try:
        kind = jax.devices()[0].device_kind.lower()
    except Exception:  # pragma: no cover - defensive
        pass
    if "v7" in kind:
        return 48 * 1024 * 1024, 2          # 64 MiB physical VMEM per TC, 2 TCs
    if "v6" in kind:
        return 96 * 1024 * 1024, 1          # 128 MiB VMEM, single TC
    if "v5e" in kind or "v5 lite" in kind or "v5lite" in kind:
        return 96 * 1024 * 1024, 1          # 128 MiB VMEM, single TC
    if "v5" in kind or "v4" in kind:
        return 64 * 1024 * 1024, 2          # megacore chips, be conservative
    return 48 * 1024 * 1024, 2              # unknown: conservative


def _pick_tile_f(f_pad, want):
    """Largest multiple of 128 <= want that divides f_pad (f_pad % 128 == 0)."""
    want = max(128, _round_up(min(want, f_pad), 128))
    best = 128
    t = 128
    while t <= want:
        if f_pad % t == 0:
            best = t
        t += 128
    return best


def _layernorm_padded(y, gamma, beta, d_model, eps):
    """LayerNorm over the last axis, ignoring zero-padded lanes >= d_model.

    `y` is f32 and its padded lanes are exactly 0 (x, W2 output columns and b2
    are all zero-padded), so only the centered value needs masking before the
    variance reduction -> a single jnp.where pass.
    """
    d_pad = y.shape[-1]
    inv_d = jnp.float32(1.0 / d_model)
    mean = jnp.sum(y, axis=-1, keepdims=True) * inv_d
    yc = y - mean
    if d_pad != d_model:
        lane = jax.lax.broadcasted_iota(jnp.int32, y.shape, dimension=y.ndim - 1)
        yc = jnp.where(lane < d_model, yc, 0.0)
    var = jnp.sum(yc * yc, axis=-1, keepdims=True) * inv_d
    return yc * jax.lax.rsqrt(var + eps) * gamma + beta


def _ffn_kernel_resident(x_ref, w1_ref, b1_ref, w2_ref, b2_ref, g_ref, beta_ref,
                         o_ref, *, compute_dtype, d_model, eps):
    """Fast path: full W1/W2 resident in VMEM, grid = (row tiles,) only."""
    x = x_ref[...]                                            # (TM, Dp)
    h = jnp.dot(x.astype(compute_dtype), w1_ref[...],
                preferred_element_type=jnp.float32)
    h = jnp.maximum(h + b1_ref[...], 0.0)
    # TODO(synk): training-mode dropout not implemented (module default p=0.0).
    y2 = jnp.dot(h.astype(compute_dtype), w2_ref[...],
                 preferred_element_type=jnp.float32)
    y = x.astype(jnp.float32) + y2 + b2_ref[...]
    o_ref[...] = _layernorm_padded(y, g_ref[...], beta_ref[...],
                                   d_model, eps).astype(o_ref.dtype)


def _ffn_kernel_tiled(x_ref, w1_ref, b1_ref, w2_ref, b2_ref, g_ref, beta_ref,
                      o_ref, acc_ref, xc_ref, *, compute_dtype, d_model, eps):
    """Fallback: dim_feedforward tiled on an inner 'arbitrary' grid axis."""
    f = pl.program_id(1)

    @pl.when(f == 0)
    def _cast_x_once():
        # Cast the x row tile to the MXU dtype once per row tile, not per F step.
        xc_ref[...] = x_ref[...].astype(compute_dtype)

    h = jnp.dot(xc_ref[...], w1_ref[...], preferred_element_type=jnp.float32)
    h = jnp.maximum(h + b1_ref[...], 0.0)
    part = jnp.dot(h.astype(compute_dtype), w2_ref[...],
                   preferred_element_type=jnp.float32)

    # Seed the accumulator with the first partial product (no zero-init store).
    @pl.when(f == 0)
    def _seed():
        acc_ref[...] = part

    @pl.when(f != 0)
    def _accumulate():
        acc_ref[...] += part

    @pl.when(f == pl.num_programs(1) - 1)
    def _finalize():
        y = x_ref[...].astype(jnp.float32) + acc_ref[...] + b2_ref[...]
        o_ref[...] = _layernorm_padded(y, g_ref[...], beta_ref[...],
                                       d_model, eps).astype(o_ref.dtype)


def prepare_ffn_params(w1, b1, w2, b2, gamma, beta, *, matmul_dtype=jnp.bfloat16):
    """Pad feature dims to multiples of 128 and cast weights to the MXU dtype.

    Done once per parameter set (hoisted out of the per-call path). Weights are
    stored (in_features, out_features), i.e. transposed vs torch Linear.weight.
    Zero padding is exact: padded W1 cols / b1 give relu(0)=0, padded W2
    rows/cols contribute 0, and LayerNorm masks padded lanes in-kernel.
    """
    d_model, dim_ff = w1.shape
    assert w2.shape == (dim_ff, d_model)
    cdt = jnp.dtype(matmul_dtype)
    d_pad = _round_up(d_model, 128)
    f_pad = _round_up(dim_ff, 128)

    def pad2(a, rows, cols):
        a = a.astype(cdt)
        if rows or cols:
            a = jnp.pad(a, ((0, rows), (0, cols)))
        return a

    def pad1(a, cols):
        a = a.astype(jnp.float32)
        if cols:
            a = jnp.pad(a, (0, cols))
        return a.reshape(1, -1)

    return dict(
        w1=pad2(w1, d_pad - d_model, f_pad - dim_ff),
        b1=pad1(b1, f_pad - dim_ff),
        w2=pad2(w2, f_pad - dim_ff, d_pad - d_model),
        b2=pad1(b2, d_pad - d_model),
        gamma=pad1(gamma, d_pad - d_model),
        beta=pad1(beta, d_pad - d_model),
        d_model=d_model, dim_ff=dim_ff, d_pad=d_pad, f_pad=f_pad,
        compute_dtype=cdt,
    )


def ffn_layer_pallas(x, params, *, tile_m=None, tile_f=512,
                     vmem_limit_bytes=None, num_tensorcores=None,
                     force_tiled=False, eps=1e-5):
    """x: (seq, batch, d_model); params from prepare_ffn_params. Returns x-shaped."""
    seq, batch, d_model = x.shape
    assert d_model == params["d_model"]
    d_pad, f_pad = params["d_pad"], params["f_pad"]
    cdt = params["compute_dtype"]

    auto_vmem, auto_tc = _device_defaults()
    if vmem_limit_bytes is None:
        vmem_limit_bytes = auto_vmem
    if num_tensorcores is None:
        num_tensorcores = auto_tc

    n = seq * batch
    x_item = jnp.dtype(x.dtype).itemsize
    sub = 16 if x_item == 2 else 8

    # Dual-TC chips (v7x/v5p/v4) keep >= 2 row tiles for megacore sharding;
    # single-TC chips (v5e/v6e) are allowed one maximal row tile.
    max_tm = max(sub, _round_up(_cdiv(n, max(1, num_tensorcores)), sub))

    weight_bytes = 2 * d_pad * f_pad * cdt.itemsize          # W1 + W2
    budget = int(0.9 * vmem_limit_bytes)

    def tm_candidates():
        base = (1024, 768, 512, 384, 256, 192, 128, 64, 32, 16, 8)
        seen, out = set(), []
        for c in base:
            tm = max(sub, min(max_tm, _round_up(c, sub)))
            if tm not in seen:
                seen.add(tm)
                out.append(tm)
        return sorted(out, reverse=True)

    def resident_budget(tm):
        return (2 * weight_bytes                              # weights (dbl-buffered)
                + 2 * tm * d_pad * x_item                     # x tiles
                + 2 * tm * d_pad * x_item                     # out tiles
                + tm * f_pad * (4 + cdt.itemsize)             # f32 h + MXU-dtype cast
                + 2 * tm * d_pad * 4                          # f32 residual/LN temps
                + (1 << 20))

    def tiled_budget(tm, tf):
        return (2 * 2 * d_pad * tf * cdt.itemsize             # W1/W2 slabs, dbl-buffered
                + 2 * tm * d_pad * x_item                     # x tiles
                + 2 * tm * d_pad * x_item                     # out tiles
                + tm * d_pad * (4 + cdt.itemsize)             # acc + xc scratch
                + tm * tf * (4 + cdt.itemsize)                # f32 h + MXU-dtype cast
                + 2 * tm * d_pad * 4                          # f32 LN temps
                + (1 << 20))

    resident = False
    tile_m_eff = None
    tile_f_eff = None
    grid_f = 1
    if not force_tiled and 2 * weight_bytes <= (2 * vmem_limit_bytes) // 3:
        if tile_m is not None:
            tm = max(sub, min(max_tm, _round_up(tile_m, sub)))
            if resident_budget(tm) <= budget:
                resident, tile_m_eff = True, tm
        else:
            for tm in tm_candidates():
                if resident_budget(tm) <= budget:
                    resident, tile_m_eff = True, tm
                    break

    if not resident:
        tile_f_eff = _pick_tile_f(f_pad, tile_f)
        grid_f = f_pad // tile_f_eff
        if tile_m is not None:
            tile_m_eff = max(sub, min(max_tm, _round_up(tile_m, sub)))
        else:
            tile_m_eff = sub
            for tm in tm_candidates():
                if tiled_budget(tm, tile_f_eff) <= budget:
                    tile_m_eff = tm
                    break

    n_pad = _round_up(n, tile_m_eff)
    grid_m = n_pad // tile_m_eff

    # Pad x rows/lanes only when needed (skip the pad when it is a no-op).
    x2d = x.reshape(n, d_model)
    if n_pad != n or d_pad != d_model:
        x2d = jnp.pad(x2d, ((0, n_pad - n), (0, d_pad - d_model)))

    if resident:
        kernel = functools.partial(_ffn_kernel_resident, compute_dtype=cdt,
                                   d_model=d_model, eps=eps)
        grid_spec = pltpu.PrefetchScalarGridSpec(
            num_scalar_prefetch=0,
            grid=(grid_m,),
            in_specs=[
                pl.BlockSpec((tile_m_eff, d_pad), lambda i: (i, 0)),   # x rows
                # Constant block index -> weights DMA'd exactly once overall.
                pl.BlockSpec((d_pad, f_pad), lambda i: (0, 0)),        # W1 (resident)
                pl.BlockSpec((1, f_pad), lambda i: (0, 0)),            # b1
                pl.BlockSpec((f_pad, d_pad), lambda i: (0, 0)),        # W2 (resident)
                pl.BlockSpec((1, d_pad), lambda i: (0, 0)),            # b2
                pl.BlockSpec((1, d_pad), lambda i: (0, 0)),            # gamma
                pl.BlockSpec((1, d_pad), lambda i: (0, 0)),            # beta
            ],
            out_specs=pl.BlockSpec((tile_m_eff, d_pad), lambda i: (i, 0)),
        )
        dim_sem = ("parallel",)
        weight_fetches = 1
    else:
        # NOTE: if the trace still shows exposed weight DMA here, W1 could be
        # pre-blocked (grid_f, d_pad, tile_f) for contiguous slab copies.
        kernel = functools.partial(_ffn_kernel_tiled, compute_dtype=cdt,
                                   d_model=d_model, eps=eps)
        grid_spec = pltpu.PrefetchScalarGridSpec(
            num_scalar_prefetch=0,
            grid=(grid_m, grid_f),
            in_specs=[
                pl.BlockSpec((tile_m_eff, d_pad), lambda i, f: (i, 0)),   # x rows
                pl.BlockSpec((d_pad, tile_f_eff), lambda i, f: (0, f)),   # W1 slab
                pl.BlockSpec((1, tile_f_eff), lambda i, f: (0, f)),       # b1 slab
                pl.BlockSpec((tile_f_eff, d_pad), lambda i, f: (f, 0)),   # W2 slab
                pl.BlockSpec((1, d_pad), lambda i, f: (0, 0)),            # b2
                pl.BlockSpec((1, d_pad), lambda i, f: (0, 0)),            # gamma
                pl.BlockSpec((1, d_pad), lambda i, f: (0, 0)),            # beta
            ],
            out_specs=pl.BlockSpec((tile_m_eff, d_pad), lambda i, f: (i, 0)),
            scratch_shapes=[pltpu.VMEM((tile_m_eff, d_pad), jnp.float32),  # acc
                            pltpu.VMEM((tile_m_eff, d_pad), cdt)],         # x cast
        )
        dim_sem = ("parallel", "arbitrary")
        weight_fetches = grid_m

    flops = 4 * n_pad * d_pad * f_pad
    bytes_accessed = (n_pad * d_pad * x_item * 2                 # x read + out write
                      + weight_fetches * weight_bytes            # weight traffic
                      + (f_pad + 3 * d_pad) * 4)                 # biases / LN params

    out2d = pl.pallas_call(
        kernel,
        out_shape=jax.ShapeDtypeStruct((n_pad, d_pad), x.dtype),
        grid_spec=grid_spec,
        compiler_params=pltpu.CompilerParams(
            dimension_semantics=dim_sem,
            vmem_limit_bytes=vmem_limit_bytes,
        ),
        cost_estimate=pl.CostEstimate(
            flops=int(flops), transcendentals=0,
            bytes_accessed=int(bytes_accessed)),
    )(x2d, params["w1"], params["b1"], params["w2"], params["b2"],
      params["gamma"], params["beta"])

    return out2d[:n, :d_model].reshape(seq, batch, d_model)


# ----------------------------------------------------------------------------
# Reference + init helpers (match the PyTorch module's semantics/init).
# ----------------------------------------------------------------------------

def _xavier_uniform(key, fan_in, fan_out, shape):
    limit = jnp.sqrt(6.0 / (fan_in + fan_out))
    return jax.random.uniform(key, shape, jnp.float32, -limit, limit)


def _linear_bias(key, fan_in, shape):
    # PyTorch nn.Linear default bias init: U(-1/sqrt(fan_in), 1/sqrt(fan_in))
    bound = 1.0 / jnp.sqrt(jnp.float32(fan_in))
    return jax.random.uniform(key, shape, jnp.float32, -bound, bound)


def ffn_reference(x, w1, b1, w2, b2, gamma, beta, eps=1e-5):
    h = jnp.maximum(x @ w1 + b1, 0.0)
    y = x + (h @ w2 + b2)
    mean = jnp.mean(y, axis=-1, keepdims=True)
    var = jnp.mean((y - mean) ** 2, axis=-1, keepdims=True)
    return (y - mean) * jax.lax.rsqrt(var + eps) * gamma + beta


if __name__ == "__main__":
    key = jax.random.PRNGKey(0)
    seq, batch, d_model, dim_ff = 8, 2, 32, 256

    k_x, k_w1, k_b1, k_w2, k_b2 = jax.random.split(key, 5)

    x = jax.random.normal(k_x, (seq, batch, d_model), jnp.float32)

    # Weights xavier-uniform (as in _reset_parameters), biases keep nn.Linear
    # default init, LayerNorm gamma=1 beta=0. Stored as (in, out).
    w1 = _xavier_uniform(k_w1, d_model, dim_ff, (d_model, dim_ff))
    b1 = _linear_bias(k_b1, d_model, (dim_ff,))
    w2 = _xavier_uniform(k_w2, dim_ff, d_model, (dim_ff, d_model))
    b2 = _linear_bias(k_b2, dim_ff, (d_model,))
    gamma = jnp.ones((d_model,), jnp.float32)
    beta = jnp.zeros((d_model,), jnp.float32)

    ref = ffn_reference(x, w1, b1, w2, b2, gamma, beta)

    # Parameters padded/cast once, outside the per-call path.
    params_f32 = prepare_ffn_params(w1, b1, w2, b2, gamma, beta,
                                    matmul_dtype=jnp.float32)
    params_bf16 = prepare_ffn_params(w1, b1, w2, b2, gamma, beta,
                                     matmul_dtype=jnp.bfloat16)

    # 1) Auto config (resident-weight fast path), f32 MXU inputs -> tight match.
    out_f32 = jax.block_until_ready(ffn_layer_pallas(x, params_f32))
    assert out_f32.shape == x.shape and out_f32.dtype == x.dtype
    assert jnp.allclose(out_f32, ref, atol=1e-5, rtol=1e-5), "resident f32 mismatch"

    # 2) Auto config, bf16 MXU inputs (default fast precision).
    out_bf16 = jax.block_until_ready(ffn_layer_pallas(x, params_bf16))
    assert out_bf16.shape == x.shape and out_bf16.dtype == x.dtype
    assert jnp.allclose(out_bf16, ref, atol=5e-2, rtol=5e-2), "resident bf16 mismatch"

    # 3) Forced F-tiled fallback (exercises the accumulator grid axis).
    out_tiled = jax.block_until_ready(
        ffn_layer_pallas(x, params_f32, force_tiled=True, tile_f=128))
    assert jnp.allclose(out_tiled, ref, atol=1e-5, rtol=1e-5), "tiled f32 mismatch"

    print("KERNEL_OK")
</pallas_src>

<mosaic_0001>
module attributes {stable_mosaic.version = 11 : i64} {
  func.func @_ffn_kernel_resident(%arg0: i32, %arg1: memref<8x128xf32, #tpu.memory_space<vmem>>, %arg2: memref<128x256xf32, #tpu.memory_space<vmem>>, %arg3: memref<1x256xf32, #tpu.memory_space<vmem>>, %arg4: memref<256x128xf32, #tpu.memory_space<vmem>>, %arg5: memref<1x128xf32, #tpu.memory_space<vmem>>, %arg6: memref<1x128xf32, #tpu.memory_space<vmem>>, %arg7: memref<1x128xf32, #tpu.memory_space<vmem>>, %arg8: memref<8x128xf32, #tpu.memory_space<vmem>>) attributes {dimension_semantics = [#tpu.dimension_semantics<parallel>], iteration_bounds = array<i64: 2>, scalar_prefetch = 0 : i64, scratch_operands = 0 : i64, tpu.core_type = #tpu.core_type<tc>, window_params = [{transform_indices = @transform_0, window_bounds = array<i64: 8, 128>}, {pipeline_mode = #tpu.pipeline_mode<synchronous>, transform_indices = @transform_1, window_bounds = array<i64: 128, 256>}, {pipeline_mode = #tpu.pipeline_mode<synchronous>, transform_indices = @transform_2, window_bounds = array<i64: 1, 256>}, {pipeline_mode = #tpu.pipeline_mode<synchronous>, transform_indices = @transform_3, window_bounds = array<i64: 256, 128>}, {pipeline_mode = #tpu.pipeline_mode<synchronous>, transform_indices = @transform_4, window_bounds = array<i64: 1, 128>}, {pipeline_mode = #tpu.pipeline_mode<synchronous>, transform_indices = @transform_5, window_bounds = array<i64: 1, 128>}, {pipeline_mode = #tpu.pipeline_mode<synchronous>, transform_indices = @transform_6, window_bounds = array<i64: 1, 128>}, {transform_indices = @transform_7, window_bounds = array<i64: 8, 128>}]} {
    %c0 = arith.constant 0 : index
    %c0_0 = arith.constant 0 : index
    %0 = vector.load %arg1[%c0, %c0_0] : memref<8x128xf32, #tpu.memory_space<vmem>>, vector<8x128xf32>
    %c0_1 = arith.constant 0 : index
    %c0_2 = arith.constant 0 : index
    %1 = vector.load %arg2[%c0_1, %c0_2] : memref<128x256xf32, #tpu.memory_space<vmem>>, vector<128x256xf32>
    %cst = arith.constant dense<0.000000e+00> : vector<8x256xf32>
    %2 = tpu.matmul %0, %1, %cst {dimension_numbers = #tpu.dot_dimension_numbers<[1], [0], [0], [1], [0, 0, 1, 1], [], []>} : vector<8x128xf32>, vector<128x256xf32>, vector<8x256xf32> -> vector<8x256xf32>
    %c0_3 = arith.constant 0 : index
    %c0_4 = arith.constant 0 : index
    %3 = vector.load %arg3[%c0_3, %c0_4] : memref<1x256xf32, #tpu.memory_space<vmem>>, vector<1x256xf32>
    %4 = vector.broadcast %3 : vector<1x256xf32> to vector<8x256xf32>
    %5 = arith.addf %2, %4 : vector<8x256xf32>
    %cst_5 = arith.constant 0.000000e+00 : f32
    %6 = vector.broadcast %cst_5 : f32 to vector<8x256xf32>
    %7 = arith.maximumf %5, %6 : vector<8x256xf32>
    %c0_6 = arith.constant 0 : index
    %c0_7 = arith.constant 0 : index
    %8 = vector.load %arg4[%c0_6, %c0_7] : memref<256x128xf32, #tpu.memory_space<vmem>>, vector<256x128xf32>
    %cst_8 = arith.constant dense<0.000000e+00> : vector<8x128xf32>
    %9 = tpu.matmul %7, %8, %cst_8 {dimension_numbers = #tpu.dot_dimension_numbers<[1], [0], [0], [1], [0, 0, 1, 1], [], []>} : vector<8x256xf32>, vector<256x128xf32>, vector<8x128xf32> -> vector<8x128xf32>
    %10 = arith.addf %0, %9 : vector<8x128xf32>
    %c0_9 = arith.constant 0 : index
    %c0_10 = arith.constant 0 : index
    %11 = vector.load %arg5[%c0_9, %c0_10] : memref<1x128xf32, #tpu.memory_space<vmem>>, vector<1x128xf32>
    %12 = vector.broadcast %11 : vector<1x128xf32> to vector<8x128xf32>
    %13 = arith.addf %10, %12 : vector<8x128xf32>
    %c0_11 = arith.constant 0 : index
    %c0_12 = arith.constant 0 : index
    %14 = vector.load %arg6[%c0_11, %c0_12] : memref<1x128xf32, #tpu.memory_space<vmem>>, vector<1x128xf32>
    %c0_13 = arith.constant 0 : index
    %c0_14 = arith.constant 0 : index
    %15 = vector.load %arg7[%c0_13, %c0_14] : memref<1x128xf32, #tpu.memory_space<vmem>>, vector<1x128xf32>
    %cst_15 = arith.constant dense<0.000000e+00> : vector<8xf32>
    %16 = vector.multi_reduction <add>, %13, %cst_15 [1] : vector<8x128xf32> to vector<8xf32>
    %17 = vector.shape_cast %16 : vector<8xf32> to vector<8x1xf32>
    %cst_16 = arith.constant 3.125000e-02 : f32
    %18 = vector.broadcast %cst_16 : f32 to vector<8x1xf32>
    %19 = arith.mulf %17, %18 : vector<8x1xf32>
    %20 = vector.broadcast %19 : vector<8x1xf32> to vector<8x128xf32>
    %21 = arith.subf %13, %20 : vector<8x128xf32>
    %22 = tpu.iota {dimensions = array<i32: 1>} : vector<8x128xi32>
    %c32_i32 = arith.constant 32 : i32
    %23 = vector.broadcast %c32_i32 : i32 to vector<8x128xi32>
    %24 = arith.cmpi slt, %22, %23 : vector<8x128xi32>
    %cst_17 = arith.constant 0.000000e+00 : f32
    %25 = vector.broadcast %cst_17 : f32 to vector<8x128xf32>
    %26 = arith.select %24, %21, %25 : vector<8x128xi1>, vector<8x128xf32>
    %27 = arith.mulf %26, %26 : vector<8x128xf32>
    %cst_18 = arith.constant dense<0.000000e+00> : vector<8xf32>
    %28 = vector.multi_reduction <add>, %27, %cst_18 [1] : vector<8x128xf32> to vector<8xf32>
    %29 = vector.shape_cast %28 : vector<8xf32> to vector<8x1xf32>
    %cst_19 = arith.constant 3.125000e-02 : f32
    %30 = vector.broadcast %cst_19 : f32 to vector<8x1xf32>
    %31 = arith.mulf %29, %30 : vector<8x1xf32>
    %cst_20 = arith.constant 9.99999974E-6 : f32
    %32 = vector.broadcast %cst_20 : f32 to vector<8x1xf32>
    %33 = arith.addf %31, %32 : vector<8x1xf32>
    %34 = math.rsqrt %33 : vector<8x1xf32>
    %35 = vector.broadcast %34 : vector<8x1xf32> to vector<8x128xf32>
    %36 = arith.mulf %26, %35 : vector<8x128xf32>
    %37 = vector.broadcast %14 : vector<1x128xf32> to vector<8x128xf32>
    %38 = arith.mulf %36, %37 : vector<8x128xf32>
    %39 = vector.broadcast %15 : vector<1x128xf32> to vector<8x128xf32>
    %40 = arith.addf %38, %39 : vector<8x128xf32>
    %c0_21 = arith.constant 0 : index
    %c0_22 = arith.constant 0 : index
    %41 = vector.load %arg8[%c0_21, %c0_22] : memref<8x128xf32, #tpu.memory_space<vmem>>, vector<8x128xf32>
    tpu.vector_store %arg8[%c0_21, %c0_22], %40 {strides = array<i32>} : memref<8x128xf32, #tpu.memory_space<vmem>>, vector<8x128xf32>,
    return
  }
  func.func @transform_0(%arg0: i32) -> (i32, i32) {
    %c0_i32 = arith.constant 0 : i32
    %c0_i32_0 = arith.constant 0 : i32
    return %arg0, %c0_i32 : i32, i32
  }
  func.func @transform_1(%arg0: i32) -> (i32, i32) {
    %c0_i32 = arith.constant 0 : i32
    %c0_i32_0 = arith.constant 0 : i32
    %c0_i32_1 = arith.constant 0 : i32
    return %c0_i32, %c0_i32_0 : i32, i32
  }
  func.func @transform_2(%arg0: i32) -> (i32, i32) {
    %c0_i32 = arith.constant 0 : i32
    %c0_i32_0 = arith.constant 0 : i32
    %c0_i32_1 = arith.constant 0 : i32
    return %c0_i32, %c0_i32_0 : i32, i32
  }
  func.func @transform_3(%arg0: i32) -> (i32, i32) {
    %c0_i32 = arith.constant 0 : i32
    %c0_i32_0 = arith.constant 0 : i32
    %c0_i32_1 = arith.constant 0 : i32
    return %c0_i32, %c0_i32_0 : i32, i32
  }
  func.func @transform_4(%arg0: i32) -> (i32, i32) {
    %c0_i32 = arith.constant 0 : i32
    %c0_i32_0 = arith.constant 0 : i32
    %c0_i32_1 = arith.constant 0 : i32
    return %c0_i32, %c0_i32_0 : i32, i32
  }
  func.func @transform_5(%arg0: i32) -> (i32, i32) {
    %c0_i32 = arith.constant 0 : i32
    %c0_i32_0 = arith.constant 0 : i32
    %c0_i32_1 = arith.constant 0 : i32
    return %c0_i32, %c0_i32_0 : i32, i32
  }
  func.func @transform_6(%arg0: i32) -> (i32, i32) {
    %c0_i32 = arith.constant 0 : i32
    %c0_i32_0 = arith.constant 0 : i32
    %c0_i32_1 = arith.constant 0 : i32
    return %c0_i32, %c0_i32_0 : i32, i32
  }
  func.func @transform_7(%arg0: i32) -> (i32, i32) {
    %c0_i32 = arith.constant 0 : i32
    %c0_i32_0 = arith.constant 0 : i32
    return %arg0, %c0_i32 : i32, i32
  }
}

</mosaic_0001>

<bundles_post_ra>
// kernel: tpu_custom_call.1
= control target key start
LH: loop header
LB: loop body
LE: loop exit
PB: predicated region body
PF: predicated region fallthrough
CT: control target
= control target key end

     0   :  { %s1198_s0 = inlined_call_operand.hbm [shape: f32[16,128], index: 0, kind: input, shape index: {}]   ;;  %s1199_s1 = inlined_call_operand.hbm [shape: f32[128,256], index: 1, kind: input, shape index: {}]   ;;  %s1200_s2 = inlined_call_operand.vmem [shape: f32[1,256], index: 2, kind: input, shape index: {}]   ;;  %s1201_s3 = inlined_call_operand.hbm [shape: f32[256,128], index: 3, kind: input, shape index: {}]   ;;  %s1202_s4 = inlined_call_operand.vmem [shape: f32[1,128], index: 4, kind: input, shape index: {}]   ;;  %s1203_s5 = inlined_call_operand.vmem [shape: f32[1,128], index: 5, kind: input, shape index: {}]   ;;  %s1204_s6 = inlined_call_operand.vmem [shape: f32[1,128], index: 6, kind: input, shape index: {}]   ;;  %s1205_s7 = inlined_call_operand.hbm [shape: f32[16,128], index: 7, kind: output, shape index: {}]  }
   0x1   :  { %1210 = sst [smem:[#allocation12_spill]] %s1199_s1 }
   0x2   :  { %1211 = sst [smem:[#allocation13_spill]] %s1201_s3 }
   0x3   :  { %12 = vsyncpa [#allocation3], 0 }
   0x4   :  { %14 = vsyncpa [#allocation3 + $0x1], 0 }
   0x5   :  { %15 = vsyncpa [#allocation6], 0 }
   0x6   :  { %16 = vsyncpa [#allocation4], 0 }
   0x7   :  { %18 = vsyncpa [#allocation4 + $0x1], 0  ;;  %s1014_s24 = smov 0   ;;  %s1016_s25 = smov 0  }
   0x8   :  { %s1018_s26 = smov 0   ;;  %s1020_s27 = smov 0  }
   0x9 LB: > { %s1035_s28 = sadd.s32 4294967295, %s963_s27   ;;  %s687_s29 = sadd.s32 4294967294, %s963_s27   ;;  %s963_s27 = sphi %s1020_s27, %s1231_s27   ;;  %s959_s26 = sphi %s1018_s26, %s1230_s26   ;;  %s955_s25 = sphi %s1016_s25, %s1229_s25   ;;  %s951_s24 = sphi %s1014_s24, %s1228_s24  }
   0xa   : > { %p44_p0 = scmp.ne.s32.totalorder %s955_s25, %s951_s24  ;;  %p1206_p1 = scmp.eq.s32.totalorder %s1035_s28, 0 }
   0xb   : > { %p200_p3 = scmp.eq.s32.totalorder %s687_s29, 1  ;;  %p688_p5 = scmp.ge.s32.totalorder %s963_s27, 1 }
   0xc   : > { %p1044_p4 = por %p1206_p1, %p44_p0  ;;  %p207_p7 = scmp.lt.s32.totalorder %s963_s27, 3 }
   0xd   : > { %p1049_p6 = por %p200_p3, %p44_p0  ;;  %s965_s10 = smov [#allocation5]  }
   0xe   : > { %s1212_s30 = scalar_select %p1044_p4, 1, 0 }
   0xf   : > { %s1213_s8 = scalar_select %p1049_p6, 1, 0 }
  0x10   : > { %p1054_p8 = pnand %p688_p5, %p207_p7  ;;  %s219_s11 = sshll.u32 %s965_s10, 4  ;;  %s220_s11 = int_to_ptr.vmem [resolvable:$true] %s219_s11 }
  0x11   : > { %s966_s13 = smov [#allocation7]   ;;  %s826_s15 = scalar_lea.vmem %s220_s11, 4096 }
  0x12   : > { %s1214_s9 = scalar_select %p1054_p8, 1, 0 }
  0x13   : > { %p753_p9 = pneg %p1054_p8  ;;  %s235_s14 = sshll.u32 %s966_s13, 4  ;;  %s236_s14 = int_to_ptr.vmem [resolvable:$true] %s235_s14 }
  0x14   : > { %p827_p13 = scmp.ne.s32.totalorder %s220_s11, %s826_s15  ;;  %p834_p5 = scmp.lt.s32.totalorder %s220_s11, %s220_s11 }
  0x15   : > { %p1063_p11 = pnand %p753_p9, %p1206_p1  ;;  %p835_p7 = scmp.lt.s32.totalorder %s826_s15, %s826_s15 }
  0x17   : > { %p817_p12 = pneg %p1063_p11  ;;  %p836_p10 = por %p835_p7, %p834_p5 }
  0x19   : > { %p829_p0 = pnand %p827_p13, %p817_p12 }
  0x1b   : > { %p830_p3 = pneg %p829_p0 }
  0x1d   : > { %p837_p9 = pnand %p836_p10, %p830_p3 }
  0x1f   : > { %840 = shalt.err (!%p837_p9)
}
  0x20   : > { %s967_s16 = smov 256   ;;  %s968_s17 = smov 16  }
  0x21   : > { %s1216_s1 = sld [smem:[#allocation12_spill]]  ;;  %s852_s20 = scalar_lea.vmem %s236_s14, 4096 }
  0x22   : > { %p853_p1 = scmp.ne.s32.totalorder %s236_s14, %s852_s20  ;;  %p860_p2 = scmp.lt.s32.totalorder %s236_s14, %s236_s14 }
  0x23   : > { %p861_p6 = scmp.lt.s32.totalorder %s852_s20, %s852_s20 }
  0x24   : > { %p855_p13 = pnand %p853_p1, %p817_p12 }
  0x25   : > { %p862_p5 = por %p861_p6, %p860_p2 }
  0x26   : > { %p856_p0 = pneg %p855_p13 }
  0x27   : > { %756 = dma.hbm_to_vmem [thread:$0]  (!%p1063_p11), %s1216_s1, 4096, %s220_s11, [#allocation6], %s967_s16, %s967_s16, %s968_s17  }
  0x28   : > { %p863_p10 = pnand %p862_p5, %p856_p0 }
  0x2a   : > { %866 = shalt.err (!%p863_p10)
}
  0x2b   : > { %s969_s21 = smov 128   ;;  %s970_s22 = smov 8  }
  0x2c   : > { %s1217_s3 = sld [smem:[#allocation13_spill]]  ;;  %s1086_s10 = sadd.s32 1, %s963_s27  }
  0x2d   : > { %s28_s11 = ssub.s32 %s963_s27, %s1086_s10  ;;  %s31_s13 = sadd.s32 1, %s959_s26 }
  0x2e   : > { %p29_p1 = scmp.eq.s32.totalorder %s28_s11, 0  ;;  %p38_p2 = scmp.ne.s32.totalorder %s959_s26, %s955_s25 }
  0x2f   : > { %p39_p6 = scmp.eq.s32.totalorder %s963_s27, 0  ;;  %p1218_p3 = scmp.eq.s32.totalorder %s1035_s28, 1 }
  0x30   : > { %s1095_s15 = scalar_select %p29_p1, %s959_s26, %s31_s13  }
  0x31   : > { %p40_p12 = por %p39_p6, %p38_p2  ;;  %p1099_p7 = por %p1218_p3, %p38_p2 }
  0x32   : > { %759 = dma.hbm_to_vmem [thread:$0]  (!%p1063_p11), %s1217_s3, 4096, %s236_s14, [#allocation6], %s969_s21, %s969_s21, %s970_s22  }
  0x33   : > { %s1219_s16 = scalar_select %p1099_p7, 1, 0 }
  0x34   : > { %p770_p9 = scmp.lt.s32.totalorder %s963_s27, 2  ;;  %s258_s12 = sand.u32 1, %s959_s26  }
  0x35   : > { %s692_s17 = sshll.u32 %s258_s12, 3  ;;  %s693_s14 = sshll.u32 %s963_s27, 7 }
  0x36   : > { %s1109_s20 = scalar_lea.hbm %s1198_s0, %s693_s14  ;;  %s262_s21 = scalar_lea.vmem [#allocation2], %s692_s17 }
  0x37   : > { %s269_s22 = sshll.u32 %s262_s21, 4  ;;  %p1111_p11 = pnand %p770_p9, %p40_p12  ;;  %s270_s22 = int_to_ptr.vmem [resolvable:$true] %s269_s22 }
  0x38   : > { %s259_s29 = scalar_lea.sflag [#allocation3], %s258_s12  ;;  %s867_s11 = scalar_lea.hbm %s1109_s20, 128 }
  0x39   : > { %p868_p13 = scmp.ne.s32.totalorder %s1109_s20, %s867_s11  ;;  %p869_p0 = pneg %p1111_p11 }
  0x3a   : > { %s872_s18 = scalar_lea.hbm %s1198_s0, 256  ;;  %p873_p1 = scmp.lt.s32.totalorder %s1109_s20, %s1198_s0 }
  0x3b   : > { %p870_p5 = pnand %p869_p0, %p868_p13  ;;  %p874_p2 = scmp.lt.s32.totalorder %s872_s18, %s867_s11 }
  0x3d   : > { %p871_p10 = pneg %p870_p5  ;;  %p875_p6 = por %p874_p2, %p873_p1 }
  0x3f   : > { %p876_p12 = pnand %p875_p6, %p871_p10 }
  0x41   : > { %879 = shalt.err (!%p876_p12)
}
  0x42   : > { %s880_s21 = scalar_lea.vmem %s270_s22, 128  ;;  %s971_s12 = smov [#allocation2]  }
  0x43   : > { %p881_p3 = scmp.ne.s32.totalorder %s270_s22, %s880_s21  ;;  %s885_s1 = sshll.u32 %s971_s12, 4  ;;  %s886_s1 = int_to_ptr.vmem [resolvable:$false] %s885_s1 }
  0x44   : > { %s887_s3 = scalar_lea.vmem %s886_s1, 256  ;;  %p888_p13 = scmp.lt.s32.totalorder %s270_s22, %s886_s1 }
  0x45   : > { %p883_p9 = pnand %p881_p3, %p869_p0  ;;  %p889_p5 = scmp.lt.s32.totalorder %s887_s3, %s880_s21 }
  0x47   : > { %p884_p7 = pneg %p883_p9  ;;  %p890_p4 = por %p889_p5, %p888_p13 }
  0x49   : > { %p891_p8 = pnand %p890_p4, %p884_p7 }
  0x4b   : > { %894 = shalt.err (!%p891_p8)
}
  0x4c   : > { %763 = dma.hbm_to_vmem [thread:$0]  (!%p1111_p11), %s1109_s20, 128, %s270_s22, %s259_s29  }
  0x4d   : > { %p1221_p10 = scmp.ne.s32.totalorder %s1214_s9, 0 }
  0x4e   : > { %s1132_s11 = sand.u32 (!%p1221_p10), 1, %s955_s25   ;;  %p1222_p4 = scmp.ne.s32.totalorder (!%p1221_p10), %s1212_s30, 0 }
  0x4f   : > { %278 = sbr.rel (%p1221_p10) target bundleno = 842 (0x34a), region = 48  ;;  %s695_s13 = sshll.u32 (!%p1221_p10), %s1132_s11, 3 }
  0x50   : > { %s281_s1 = scalar_lea.sflag (!%p1221_p10), [#allocation3], %s1132_s11  ;;  %s1138_s3 = scalar_lea.vmem (!%p1221_p10), [#allocation2], %s695_s13 }
  0x54   : > { %938 = dma.done.wait (%p1222_p4), %s281_s1, 128  }
  0x55   : > { %940 = vsyncadd (%p1222_p4), %s281_s1, 4294967168  ;;  %p1223_p8 = scmp.eq.s32.totalorder %s1035_s28, 0 }
  0x57   : > { %942 = dma.done.wait (%p1223_p8), [#allocation6], 8192   ;;  %p1224_p7 = pmov %p1223_p8 }
  0x58   : > { %v972_v0 = vmov 0.0   ;;  %v355_v1 = vld [vmem:[#allocation5 + $0xf8] sm:$0xff]  ;;  %v354_v2 = vld [vmem:[#allocation5 + $0xf0] sm:$0xff]  ;;  %v353_v3 = vld [vmem:[#allocation5 + $0xe8] sm:$0xff]  ;;  %s703_s19 = sshll.u32 %s1035_s28, 7  ;;  %s322_s17 = scalar_lea.vmem [#allocation8], %s695_s13 }
  0x59   : > { %944 = vsyncadd (%p1224_p7), [#allocation6], 4294959104  ;;  %432 = vmatprep.mubr.f32.mxu0 %v972_v0  ;;  %368 = vmatprep.subr.mxu0 %v355_v1  ;;  %v352_v4 = vld [vmem:[#allocation5 + $0xe0] sm:$0xff]  ;;  %v351_v5 = vld [vmem:[#allocation5 + $0xd8] sm:$0xff]  ;;  %s598_s21 = sshll.u32 %s322_s17, 4  ;;  %s585_s30 = scalar_lea.sflag [#allocation4], %s1132_s11  ;;  %s599_s21 = int_to_ptr.vmem [resolvable:$true] %s598_s21 }
  0x5a   : > { %369 = vmatpush1.msra.mxu0 %v354_v2  ;;  %v350_v6 = vld [vmem:[#allocation5 + $0xd0] sm:$0xff]  ;;  %v349_v7 = vld [vmem:[#allocation5 + $0xc8] sm:$0xff]  ;;  %v348_v8 = vld [vmem:[#allocation5 + $0xc0] sm:$0xff]  ;;  %v358_v2 = vlaneseq  ;;  %s895_s9 = scalar_lea.vmem %s599_s21, 128  ;;  %p1225_p0 = scmp.ne.s32.totalorder %s1219_s16, 0 }
  0x5b   : > { %370 = vmatprep.subr.mxu0 %v353_v3  ;;  %v347_v9 = vld [vmem:[#allocation5 + $0xb8] sm:$0xff]  ;;  %v346_v10 = vld [vmem:[#allocation5 + $0xb0] sm:$0xff]  ;;  %v345_v11 = vld [vmem:[#allocation5 + $0xa8] sm:$0xff]  ;;  %p896_p11 = scmp.ne.s32.totalorder %s599_s21, %s895_s9  ;;  %s973_s20 = smov [#allocation8]  }
  0x5c   : > { %371 = vmatpush1.msra.mxu0 %v352_v4  ;;  %v344_v12 = vld [vmem:[#allocation5 + $0xa0] sm:$0xff]  ;;  %v343_v13 = vld [vmem:[#allocation5 + $0x98] sm:$0xff]  ;;  %v342_v14 = vld [vmem:[#allocation5 + $0x90] sm:$0xff]  ;;  %v359_v3 = vshrl.u32 %v358_v2, 7  ;;  %s899_s22 = sshll.u32 %s973_s20, 4  ;;  %s900_s22 = int_to_ptr.vmem [resolvable:$false] %s899_s22 }
  0x5d   : > { %372 = vmatprep.subr.mxu0 %v351_v5  ;;  %v472_v15 = vld [vmem:[#allocation7 + $0xf8] sm:$0xff]  ;;  %v471_v17 = vld [vmem:[#allocation7 + $0xf0] sm:$0xff]  ;;  %v341_v18 = vld [vmem:[#allocation5 + $0x88] sm:$0xff]  ;;  %p897_p1 = pnand %p896_p11, %p1225_p0  ;;  %s901_s28 = scalar_lea.vmem %s900_s22, 256 }
  0x5e   : > { %373 = vmatpush1.msra.mxu0 %v350_v6  ;;  %v456_v16 = vld [vmem:[#allocation7 + $0x78] sm:$0xff]  ;;  %706 = vmatprep.subr.mxu1 %v472_v15  ;;  %v455_v19 = vld [vmem:[#allocation7 + $0x70] sm:$0xff]  ;;  %v340_v20 = vld [vmem:[#allocation5 + $0x80] sm:$0xff]  ;;  %v360_v4 = vsub.s32 0, %v359_v3  ;;  %v364_v6 = vsub.s32 1, %v359_v3  ;;  %p902_p6 = scmp.lt.s32.totalorder %s599_s21, %s900_s22  ;;  %p903_p12 = scmp.lt.s32.totalorder %s901_s28, %s895_s9 }
  0x5f   : > { %374 = vmatprep.subr.mxu0 %v349_v7  ;;  %707 = vmatpush3.msra.mxu1 %v456_v16  ;;  %v470_v21 = vld [vmem:[#allocation7 + $0xe8] sm:$0xff]  ;;  %v339_v22 = vld [vmem:[#allocation5 + $0x78] sm:$0xff]  ;;  %v338_v24 = vld [vmem:[#allocation5 + $0x70] sm:$0xff]  ;;  %p898_p2 = pneg %p897_p1 }
  0x60   : > { %375 = vmatpush1.msra.mxu0 %v348_v8  ;;  %708 = vmatprep.subr.mxu1 %v471_v17  ;;  %v454_v23 = vld [vmem:[#allocation7 + $0x68] sm:$0xff]  ;;  %v469_v25 = vld [vmem:[#allocation7 + $0xe0] sm:$0xff]  ;;  %v468_v29 = vld [vmem:[#allocation7 + $0xd8] sm:$0xff]  ;;  %p904_p3 = por %p903_p12, %p902_p6 }
  0x61   : > { %376 = vmatprep.subr.mxu0 %v347_v9  ;;  %709 = vmatpush3.msra.mxu1 %v455_v19  ;;  %v337_v26 = vld [vmem:[#allocation5 + $0x68] sm:$0xff]  ;;  %v453_v27 = vld [vmem:[#allocation7 + $0x60] sm:$0xff]  ;;  %v335_v30 = vld [vmem:[#allocation5 + $0x58] sm:$0xff] }
  0x62   : > { %377 = vmatpush1.msra.mxu0 %v346_v10  ;;  %710 = vmatprep.subr.mxu1 %v470_v21  ;;  %v336_v28 = vld [vmem:[#allocation5 + $0x60] sm:$0xff]  ;;  %v452_v31 = vld [vmem:[#allocation7 + $0x58] sm:$0xff]  ;;  %v334_v32 = vld [vmem:[#allocation5 + $0x50] sm:$0xff]  ;;  %v559_v21 = vand.u32 127, %v358_v2  ;;  %p905_p9 = pnand %p904_p3, %p898_p2 }
  0x63   : > { %378 = vmatprep.subr.mxu0 %v345_v11  ;;  %711 = vmatpush3.msra.mxu1 %v454_v23  ;;  %v467_v33 = vld [vmem:[#allocation7 + $0xd0] sm:$0xff]  ;;  %v333_v34 = vld [vmem:[#allocation5 + $0x48] sm:$0xff]  ;;  %v332_v36 = vld [vmem:[#allocation5 + $0x40] sm:$0xff] }
  0x64   : > { %379 = vmatpush1.msra.mxu0 %v344_v12  ;;  %712 = vmatprep.subr.mxu1 %v469_v25  ;;  %v451_v35 = vld [vmem:[#allocation7 + $0x50] sm:$0xff]  ;;  %v466_v37 = vld [vmem:[#allocation7 + $0xc8] sm:$0xff]  ;;  %v331_v38 = vld [vmem:[#allocation5 + $0x38] sm:$0xff]  ;;  %vm560_vm0 = vcmp.lt.s32.totalorder %v559_v21, 32 }
  0x65   : > { %380 = vmatprep.subr.mxu0 %v343_v13  ;;  %713 = vmatpush3.msra.mxu1 %v453_v27  ;;  %v450_v39 = vld [vmem:[#allocation7 + $0x48] sm:$0xff]  ;;  %v330_v40 = vld [vmem:[#allocation5 + $0x30] sm:$0xff]  ;;  %v465_v41 = vld [vmem:[#allocation7 + $0xc0] sm:$0xff] }
  0x66   : > { %381 = vmatpush1.msra.mxu0 %v342_v14  ;;  %714 = vmatprep.subr.mxu1 %v468_v29  ;;  %v329_v42 = vld [vmem:[#allocation5 + $0x28] sm:$0xff]  ;;  %v449_v43 = vld [vmem:[#allocation7 + $0x40] sm:$0xff]  ;;  %v464_v45 = vld [vmem:[#allocation7 + $0xb8] sm:$0xff] }
  0x67   : > { %382 = vmatprep.subr.mxu0 %v341_v18  ;;  %715 = vmatpush3.msra.mxu1 %v452_v31  ;;  %v328_v44 = vld [vmem:[#allocation5 + $0x20] sm:$0xff]  ;;  %v327_v46 = vld [vmem:[#allocation5 + $0x18] sm:$0xff]  ;;  %v326_v48 = vld [vmem:[#allocation5 + $0x10] sm:$0xff] }
  0x68   : > { %383 = vmatpush1.msra.mxu0 %v340_v20  ;;  %716 = vmatprep.subr.mxu1 %v467_v33  ;;  %v448_v47 = vld [vmem:[#allocation7 + $0x38] sm:$0xff]  ;;  %v463_v49 = vld [vmem:[#allocation7 + $0xb0] sm:$0xff]  ;;  %v325_v50 = vld [vmem:[#allocation5 + $0x8] sm:$0xff] }
  0x69   : > { %384 = vmatprep.subr.mxu0 %v339_v22  ;;  %717 = vmatpush3.msra.mxu1 %v451_v35  ;;  %v447_v51 = vld [vmem:[#allocation7 + $0x30] sm:$0xff]  ;;  %v324_v52 = vld [vmem:[#allocation5] sm:$0xff]  ;;  %v462_v53 = vld [vmem:[#allocation7 + $0xa8] sm:$0xff] }
  0x6a   : > { %385 = vmatpush1.msra.mxu0 %v338_v24  ;;  %718 = vmatprep.subr.mxu1 %v466_v37  ;;  %v323_v54 = vld [vmem:[%s1138_s3] sm:$0xff]  ;;  %v446_v55 = vld [vmem:[#allocation7 + $0x28] sm:$0xff]  ;;  %v461_v56 = vld [vmem:[#allocation7 + $0xa0] sm:$0xff]  ;;  %s596_s3 = scalar_lea.hbm %s1205_s7, %s703_s19 }
  0x6b   : > { %386 = vmatprep.subr.mxu0 %v337_v26  ;;  %719 = vmatpush3.msra.mxu1 %v450_v39  ;;  %v445_v57 = vld [vmem:[#allocation7 + $0x20] sm:$0xff]  ;;  %v460_v58 = vld [vmem:[#allocation7 + $0x98] sm:$0xff]  ;;  %v459_v60 = vld [vmem:[#allocation7 + $0x90] sm:$0xff] }
  0x6c   : > { %387 = vmatpush1.msra.mxu0 %v336_v28  ;;  %720 = vmatprep.subr.mxu1 %v465_v41  ;;  %v444_v59 = vld [vmem:[#allocation7 + $0x18] sm:$0xff]  ;;  %v443_v61 = vld [vmem:[#allocation7 + $0x10] sm:$0xff]  ;;  %v458_v62 = vld [vmem:[#allocation7 + $0x88] sm:$0xff] }
  0x6d   : > { %388 = vmatprep.subr.mxu0 %v335_v30  ;;  %721 = vmatpush3.msra.mxu1 %v449_v43  ;;  %v442_v63 = vld [vmem:[#allocation7 + $0x8] sm:$0xff]  ;;  %v457_v0 = vld [vmem:[#allocation7 + $0x80] sm:$0xff]  ;;  %v356_v5 = vld [vmem:[%s1200_s2] sm:$0x3] }
  0x6e   : > { %389 = vmatpush1.msra.mxu0 %v334_v32  ;;  %722 = vmatprep.subr.mxu1 %v464_v45  ;;  %v441_v1 = vld [vmem:[#allocation7] sm:$0xff]  ;;  %v361_v7 = vrot.slane %v356_v5, %v360_v4  ;;  %v365_v8 = vrot.slane %v356_v5, %v364_v6  ;;  %v699_v18 = vld [vmem:[%s1202_s4] ss:$0 sm:$0xff] }
  0x6f   : > { %390 = vmatprep.subr.mxu0 %v333_v34  ;;  %723 = vmatpush3.msra.mxu1 %v448_v47  ;;  %v700_v31 = vld [vmem:[%s1203_s5] ss:$0 sm:$0xff] }
  0x70   : > { %391 = vmatpush1.msra.mxu0 %v332_v36  ;;  %724 = vmatprep.subr.mxu1 %v463_v49  ;;  %v701_v33 = vld [vmem:[%s1204_s6] ss:$0 sm:$0xff] }
  0x71   : > { %392 = vmatprep.subr.mxu0 %v331_v38  ;;  %725 = vmatpush3.msra.mxu1 %v447_v51 }
  0x72   : > { %393 = vmatpush1.msra.mxu0 %v330_v40  ;;  %726 = vmatprep.subr.mxu1 %v462_v53 }
  0x73   : > { %394 = vmatprep.subr.mxu0 %v329_v42  ;;  %727 = vmatpush3.msra.mxu1 %v446_v55 }
  0x74   : > { %395 = vmatpush1.msra.mxu0 %v328_v44  ;;  %728 = vmatprep.subr.mxu1 %v461_v56 }
  0x75   : > { %396 = vmatprep.subr.mxu0 %v327_v46  ;;  %729 = vmatpush3.msra.mxu1 %v445_v57 }
  0x76   : > { %397 = vmatpush1.msra.mxu0 %v326_v48  ;;  %730 = vmatprep.subr.mxu1 %v460_v58 }
  0x77   : > { %398 = vmatprep.subr.mxu0 %v325_v50  ;;  %731 = vmatpush3.msra.mxu1 %v444_v59 }
  0x78   : > { %399 = vmatpush1.msra.mxu0 %v324_v52  ;;  %732 = vmatprep.subr.mxu1 %v459_v60 }
  0x79   : > { %433 = vmatmul.mubr.f32.vlgmr.msra.gmra.mxu0 %v323_v54  ;;  %733 = vmatpush3.msra.mxu1 %v443_v61 }
  0x7a   : > { %734 = vmatprep.subr.mxu1 %v458_v62 }
  0x7b   : > { %735 = vmatpush3.msra.mxu1 %v442_v63 }
  0x7c   : > { %736 = vmatprep.subr.mxu1 %v457_v0 }
  0x7d   : > { %737 = vmatpush3.msra.mxu1 %v441_v1 }
 0x139   : > { %v434_v9 = vpop.f32.mrf.mxu0 }
 0x13a   : > { %v435_v10 = vadd.f32 %v434_v9, %v361_v7 }
 0x13b   : > { %v436_v11 = vpop.f32.mrf.mxu0 }
 0x13c   : > { %v437_v12 = vadd.f32 %v436_v11, %v365_v8  ;;  %v439_v14 = vmax.f32 %v435_v10, 0.0 }
 0x13e   : > { %v440_v13 = vmax.f32 %v437_v12, 0.0 }
 0x140   : > { %537 = vmatprep.mubr.f32.mxu1 %v440_v13 }
 0x141   : > { %538 = vmatmul.mubr.f32.vlgmr.msra.gmra.mxu1 %v439_v14 }
 0x201   : > { %v738_v15 = vpop.f32.mrf.mxu1 }
 0x203   : > { %v739_v16 = vpop.f32.mrf.mxu1 }
 0x204   : > { %v740_v17 = vadd.f32 %v739_v16, %v738_v15 }
 0x206   : > { %v543_v19 = vadd.f32 %v740_v17, %v323_v54 }
 0x208   : > { %v551_v20 = vadd.f32 %v699_v18, %v543_v19 }
 0x20a   : > { %554 = vadd.xlane.f32.xlu0 %v551_v20 }
 0x293   : > { %v555_v22 = vpop.xlane.xlu0 %554 }
 0x294   : > { %v556_v23 = vmul.f32 0.03125, %v555_v22 }
 0x296   : > { %v557_v24 = vsub.f32 %v551_v20, %v556_v23 }
 0x298   : > { %v561_v25 = vsel %vm560_vm0, %v557_v24, 0.0 }
 0x299   : > { %v562_v26 = vmul.f32 %v561_v25, %v561_v25 }
 0x29b   : > { %563 = vadd.xlane.f32.xlu0 %v562_v26 }
 0x324   : > { %v564_v27 = vpop.xlane.xlu0 %563 }
 0x325   : > { %v565_v28 = vmul.f32 0.03125, %v564_v27 }
 0x327   : > { %v566_v29 = vadd.f32 1e-05, %v565_v28 }
 0x329   : > { %813 = vrsqrt.f32 %v566_v29 }
 0x336   : > { %v814_v30 = vpop.eup %813 }
 0x337   : > { %v568_v32 = vmul.f32 %v814_v30, %v561_v25 }
 0x339   : > { %v575_v34 = vmul.f32 %v700_v31, %v568_v32 }
 0x33b   : > { %v582_v35 = vadd.f32 %v701_v33, %v575_v34 }
 0x33d   : > { %583 = vst [vmem:[%s322_s17] sm:$0xff] %v582_v35 }
 0x33e   : > { %908 = shalt.err (!%p905_p9)
}
 0x33f   : > { %s909_s13 = scalar_lea.hbm %s596_s3, 128  ;;  %s913_s29 = scalar_lea.hbm %s1205_s7, 256 }
 0x340   : > { %p910_p13 = scmp.ne.s32.totalorder %s596_s3, %s909_s13  ;;  %p914_p4 = scmp.lt.s32.totalorder %s596_s3, %s1205_s7 }
 0x341   : > { %p915_p8 = scmp.lt.s32.totalorder %s913_s29, %s909_s13 }
 0x342   : > { %p911_p5 = pnand %p910_p13, %p1225_p0 }
 0x343   : > { %p916_p7 = por %p915_p8, %p914_p4 }
 0x344   : > { %p912_p10 = pneg %p911_p5 }
 0x346   : > { %p917_p11 = pnand %p916_p7, %p912_p10 }
 0x348   : > { %920 = shalt.err (!%p917_p11)
}
 0x349   : > { %751 = dma.vmem_to_hbm [thread:$0]  (%p1225_p0), %s599_s21, 128, %s596_s3, %s585_s30  }
 0x34a PF: > { %s610_s19 = sand.u32 1, %s951_s24   ;;  %p1226_p1 = scmp.ne.s32.totalorder %s1213_s8, 0 }
 0x34b   : > { %p1227_p2 = scmp.ge.s32.totalorder %s963_s27, 2  ;;  %s611_s17 = scalar_lea.sflag [#allocation4], %s610_s19 }
 0x34d   : > { %p765_p6 = pnand %p1227_p2, %p1226_p1 }
 0x34f   : > { %p766_p12 = pneg %p765_p6 }
 0x351   : > { %946 = dma.done.wait (%p766_p12), %s611_s17, 128  }
 0x352   : > { %948 = vsyncadd (%p766_p12), %s611_s17, 4294967168  ;;  %p21_p3 = scmp.ge.s32.totalorder %s1086_s10, 4   ;;  %s1228_s24 = smov %s955_s25 }
 0x353   : > { %s1229_s25 = smov %s959_s26  ;;  %s1230_s26 = smov %s1095_s15 }
 0x354   : > { %s1231_s27 = smov %s1086_s10  ;;  %23 = sbr.rel (!%p21_p3) target bundleno = 9 (0x9), region = 101 }
 0x359   :  { %616 = vsyncpa [#allocation3], 1 }
 0x35a   :  { %618 = vsyncpa [#allocation3 + $0x1], 1 }
 0x35b   :  { %619 = vsyncpa [#allocation6], 1 }
 0x35c   :  { %620 = vsyncpa [#allocation4], 1 }
 0x35d   :  { %622 = vsyncpa [#allocation4 + $0x1], 1 }

</bundles_post_ra>
